<compile_context>
chip_gen: v7x
topology: tpu7x:2x2x1
jax: 0.10.0
libtpu: 0.0.40
codegen_flags: <defaults>
</compile_context>

<pallas_src>
import jax
import jax.numpy as jnp
from jax import lax
from jax.experimental import pallas as pl
from jax.experimental.pallas import tpu as pltpu

BN_EPS = 1e-5


def _vmem_limit_bytes():
    """0.75 * per-core VMEM capacity, capped at 96 MiB (=> 48 MiB on v7x, 96 on v5e/v6e)."""
    cap = 128 * 1024 * 1024
    try:
        cap = int(getattr(pltpu.get_tpu_info(), "vmem_capacity_bytes", cap))
    except Exception:
        pass
    return min(int(0.75 * cap), 96 * 1024 * 1024)


# ---------------------------------------------------------------------------
# Pallas kernel 1: per-channel (sum, sum-of-squares) of an NHWC tensor.
# Needed once per NetworkBlock (for the very first bn1); all later BN statistics
# are emitted for free by the fused conv kernels below.
# ---------------------------------------------------------------------------
def channel_stats(x):
    N, H, W, C = x.shape

    def kernel(x_ref, s_ref, q_ref):
        v = x_ref[0].astype(jnp.float32)                       # (H, W, C)
        s_ref[0] = jnp.sum(jnp.sum(v, axis=0), axis=0, keepdims=True)
        q_ref[0] = jnp.sum(jnp.sum(v * v, axis=0), axis=0, keepdims=True)

    s, q = pl.pallas_call(
        kernel,
        out_shape=(jax.ShapeDtypeStruct((N, 1, C), jnp.float32),
                   jax.ShapeDtypeStruct((N, 1, C), jnp.float32)),
        grid=(N,),
        in_specs=[pl.BlockSpec((1, H, W, C), lambda n: (n, 0, 0, 0))],
        out_specs=(pl.BlockSpec((1, 1, C), lambda n: (n, 0, 0)),
                   pl.BlockSpec((1, 1, C), lambda n: (n, 0, 0))),
        compiler_params=pltpu.CompilerParams(dimension_semantics=("parallel",)),
    )(x)
    return jnp.sum(s, axis=(0, 1)), jnp.sum(q, axis=(0, 1))


def fold_bn(sum_c, sumsq_c, count, gamma, beta):
    """Fold training-mode BN into a per-channel affine: y = x*scale + shift."""
    mean = sum_c / count
    var = jnp.maximum(sumsq_c / count - mean * mean, 0.0)      # clamp cancellation
    scale = gamma * lax.rsqrt(var + BN_EPS)
    shift = beta - mean * scale
    return scale, shift


# In-register horizontal shifts of a (rows, cols, Cin) activation tile. The zero
# column provides the conv's horizontal padding, so no column halo is ever stored.
def _shift_right_cols(v, cin):                                  # value at col c-1
    z = jnp.zeros((v.shape[0], 1, cin), v.dtype)
    return jnp.concatenate([z, v[:, :-1, :]], axis=1)


def _shift_left_cols(v, cin):                                   # value at col c+1
    z = jnp.zeros((v.shape[0], 1, cin), v.dtype)
    return jnp.concatenate([v[:, 1:, :], z], axis=1)


# ---------------------------------------------------------------------------
# Pallas kernel 2: fused  relu(x*scale+shift) -> conv3x3 (pad 1, stride s)
#                  [+ fused 1x1 stride-s shortcut] [+ fused residual add]
#                  + per-image BN batch statistics of the produced activation.
# ---------------------------------------------------------------------------
def fused_block_conv(x, scale, shift, w, *, stride, shortcut_w=None, residual=None):
    """
    x:          (N, H, W, Cin) f32 or bf16 NHWC
    scale/shift:(Cin,) folded BN affine; pre-activation a = relu(x*scale + shift)
    w:          (3, 3, Cin, Cout) f32 HWIO
    shortcut_w: optional (1, 1, Cin, Cout) -> also returns conv1x1_stride(a)
    residual:   optional (N, Ho*Wo, Cout) bf16, added to the conv output in-kernel

    Returns (y, sum_c, sumsq_c[, shortcut]); y / shortcut are bf16 (N, Ho*Wo, Cout),
    the per-channel sums are f32 (taken from the f32 accumulator).
    """
    N, H, W, Cin = x.shape
    KH, KW, _, Cout = w.shape
    assert (KH, KW) == (3, 3)
    assert stride in (1, 2)
    if stride == 2:
        assert H % 2 == 0 and W % 2 == 0
    Ho, Wo = H // stride, W // stride
    HoWo = Ho * Wo
    has_short = shortcut_w is not None
    has_res = residual is not None

    # Small-Cin stages: a single im2col matmul with K = 9*Cin.  Otherwise 3 row-tap
    # matmuls with K = 3*Cin (fills the 256-deep v6e/v7x MXU contraction for WRN widths).
    im2col9 = Cin <= 32
    K3 = 3 * Cin

    # Weights as bf16 contraction-major slabs matching the in-kernel LHS channel layout
    # (row-tap dy major, horizontal tap dx minor, then ci).
    if im2col9:
        w_mm = w.reshape(9 * Cin, Cout).astype(jnp.bfloat16)
        w_shape, w_map = (9 * Cin, Cout), (lambda n: (0, 0))
    else:
        w_mm = w.reshape(3, 3 * Cin, Cout).astype(jnp.bfloat16)
        w_shape, w_map = (3, 3 * Cin, Cout), (lambda n: (0, 0, 0))

    sc_in = scale.reshape(1, Cin).astype(jnp.float32)
    sh_in = shift.reshape(1, Cin).astype(jnp.float32)

    if stride == 1:
        x_in = x
        x_spec = pl.BlockSpec((1, Ho, Wo, Cin), lambda n: (n, 0, 0, 0))
        scratch = [pltpu.VMEM((Ho + 2, Wo, K3), jnp.bfloat16)]
    else:
        # Free (metadata-only) reshape: expose row/col parity as their own dims so the
        # kernel decimates by whole-dim indexing (no mid-lane-offset slices).
        x_in = x.reshape(N, Ho, 2, Wo, 2, Cin)
        x_spec = pl.BlockSpec((1, Ho, 2, Wo, 2, Cin), lambda n: (n, 0, 0, 0, 0, 0))
        scratch = [pltpu.VMEM((Ho, Wo, K3), jnp.bfloat16),        # even input rows (dy=1)
                   pltpu.VMEM((Ho + 1, Wo, K3), jnp.bfloat16)]    # odd rows + zero halo row

    def kernel(*refs):
        it = iter(refs)
        x_ref = next(it)
        sc_ref = next(it)
        sh_ref = next(it)
        w_ref = next(it)
        sw_ref = next(it) if has_short else None
        res_ref = next(it) if has_res else None
        y_ref = next(it)
        s_ref = next(it)
        q_ref = next(it)
        so_ref = next(it) if has_short else None
        bufs = list(it)

        short_acc = None
        if stride == 1:
            buf, = bufs
            sc = sc_ref[...].reshape(1, 1, Cin)
            sh = sh_ref[...].reshape(1, 1, Cin)
            a = jnp.maximum(x_ref[0].astype(jnp.float32) * sc + sh, 0.0)
            a = a.astype(jnp.bfloat16)                                # (Ho, Wo, Cin)
            # Lane-concat of the 3 horizontal taps, built ONCE (replaces 9 per-tap
            # relayout copies of the old shift-and-matmul loop).
            acol = jnp.concatenate(
                [_shift_right_cols(a, Cin), a, _shift_left_cols(a, Cin)], axis=-1)
            buf[pl.ds(1, Ho), :, :] = acol
            zrow = jnp.zeros((Wo, K3), jnp.bfloat16)
            buf[0] = zrow                                             # top halo row
            buf[Ho + 1] = zrow                                        # bottom halo row
            if has_short:                                             # 1x1 stride-1 shortcut
                short_acc = jnp.dot(a.reshape(HoWo, Cin), sw_ref[...],
                                    preferred_element_type=jnp.float32)
            # Row-tap LHS: contiguous leading-dim windows of the scratch (free slices).
            taps = [buf[pl.ds(dy, Ho), :, :] for dy in range(3)]
        else:
            buf_e, buf_o = bufs
            sc = sc_ref[...].reshape(1, 1, 1, Cin)
            sh = sh_ref[...].reshape(1, 1, 1, Cin)

            def phase_act(p):
                v = x_ref[0, :, p, :, :, :].astype(jnp.float32)       # (Ho, Wo, 2, Cin)
                ap = jnp.maximum(v * sc + sh, 0.0).astype(jnp.bfloat16)
                return ap[:, :, 0, :], ap[:, :, 1, :]                 # col parity 0 / 1

            a00, a01 = phase_act(0)          # even input rows  -> the dy = 1 tap
            a10, a11 = phase_act(1)          # odd  input rows  -> the dy = 0, 2 taps
            buf_e[...] = jnp.concatenate(
                [_shift_right_cols(a01, Cin), a00, a01], axis=-1)
            buf_o[0] = jnp.zeros((Wo, K3), jnp.bfloat16)              # row -1 halo
            buf_o[pl.ds(1, Ho), :, :] = jnp.concatenate(
                [_shift_right_cols(a11, Cin), a10, a11], axis=-1)
            if has_short:
                # 1x1 stride-2 shortcut reads exactly a[0::2, 0::2, :] = a00.
                short_acc = jnp.dot(a00.reshape(HoWo, Cin), sw_ref[...],
                                    preferred_element_type=jnp.float32)
            taps = [buf_o[pl.ds(0, Ho), :, :],       # dy = 0 (input row 2*oy - 1)
                    buf_e[...],                      # dy = 1 (input row 2*oy    )
                    buf_o[pl.ds(1, Ho), :, :]]       # dy = 2 (input row 2*oy + 1)

        acc = (res_ref[0].astype(jnp.float32) if has_res
               else jnp.zeros((HoWo, Cout), jnp.float32))
        if im2col9:
            # One matmul, K = 9*Cin, single accumulator pass.
            lhs = jnp.concatenate(taps, axis=-1).reshape(HoWo, 9 * Cin)
            acc = acc + jnp.dot(lhs, w_ref[...], preferred_element_type=jnp.float32)
        else:
            # Three matmuls, K = 3*Cin each.
            for dy in range(3):
                acc = acc + jnp.dot(taps[dy].reshape(HoWo, K3), w_ref[dy],
                                    preferred_element_type=jnp.float32)

        # bf16 activation to HBM; BN batch statistics from the f32 accumulator.
        y_ref[0] = acc.astype(jnp.bfloat16)
        s_ref[0] = jnp.sum(acc, axis=0, keepdims=True)
        q_ref[0] = jnp.sum(acc * acc, axis=0, keepdims=True)
        if has_short:
            so_ref[0] = short_acc.astype(jnp.bfloat16)

    def build_and_call(single_buffer_consts):
        def const_spec(shape, index_map):
            # Grid-invariant operands: single-buffer to save VMEM (matters on v7x).
            if single_buffer_consts:
                return pl.BlockSpec(shape, index_map, pipeline_mode=pl.Buffered(1))
            return pl.BlockSpec(shape, index_map)

        in_specs = [x_spec,
                    const_spec((1, Cin), lambda n: (0, 0)),
                    const_spec((1, Cin), lambda n: (0, 0)),
                    const_spec(w_shape, w_map)]
        args = [x_in, sc_in, sh_in, w_mm]
        if has_short:
            in_specs.append(const_spec((Cin, Cout), lambda n: (0, 0)))
            args.append(shortcut_w.reshape(Cin, Cout).astype(jnp.bfloat16))
        if has_res:
            in_specs.append(pl.BlockSpec((1, HoWo, Cout), lambda n: (n, 0, 0)))
            args.append(residual)

        out_shape = [jax.ShapeDtypeStruct((N, HoWo, Cout), jnp.bfloat16),
                     jax.ShapeDtypeStruct((N, 1, Cout), jnp.float32),
                     jax.ShapeDtypeStruct((N, 1, Cout), jnp.float32)]
        out_specs = [pl.BlockSpec((1, HoWo, Cout), lambda n: (n, 0, 0)),
                     pl.BlockSpec((1, 1, Cout), lambda n: (n, 0, 0)),
                     pl.BlockSpec((1, 1, Cout), lambda n: (n, 0, 0))]
        if has_short:
            out_shape.append(jax.ShapeDtypeStruct((N, HoWo, Cout), jnp.bfloat16))
            out_specs.append(pl.BlockSpec((1, HoWo, Cout), lambda n: (n, 0, 0)))

        # TODO(synk): add an output-row grid axis (with a 1-row halo) so v7x's two
        #             TensorCores get work even at N == 1 and per-step VMEM stays
        #             bounded for large H*W*C stages.
        return pl.pallas_call(
            kernel,
            out_shape=tuple(out_shape),
            grid=(N,),
            in_specs=in_specs,
            out_specs=tuple(out_specs),
            scratch_shapes=scratch,
            compiler_params=pltpu.CompilerParams(
                dimension_semantics=("parallel",),
                vmem_limit_bytes=_vmem_limit_bytes()),
        )(*args)

    try:
        outs = build_and_call(True)
    except Exception:
        # Older Pallas without BlockSpec(pipeline_mode=...): default double-buffering.
        outs = build_and_call(False)

    y, s_part, q_part = outs[0], outs[1], outs[2]
    s_c = jnp.sum(s_part, axis=(0, 1))
    q_c = jnp.sum(q_part, axis=(0, 1))
    if has_short:
        return y, s_c, q_c, outs[3]
    return y, s_c, q_c


# ---------------------------------------------------------------------------
# BasicBlock / NetworkBlock forward (NHWC) built from the Pallas kernels.
# ---------------------------------------------------------------------------
def basic_block(x, p, stride, x_stats=None):
    N, H, W, Cin = x.shape
    Cout = p["conv1_w"].shape[-1]
    equal_in_out = (Cin == Cout)
    assert equal_in_out == ("short_w" not in p)
    # Identity shortcut is only shape-valid at stride 1 (as in the torch module).
    assert stride == 1 or not equal_in_out

    # bn1 (training mode: batch stats), folded into a per-channel scale/shift.
    if x_stats is None:
        s_in, q_in = channel_stats(x)      # only for the very first block's input
    else:
        s_in, q_in = x_stats               # produced for free by the previous conv kernel
    scale1, shift1 = fold_bn(s_in, q_in, N * H * W, p["bn1_gamma"], p["bn1_beta"])

    # conv1( relu(bn1(x)) ), stride s  [+ fused 1x1 shortcut, + fused bn2 stats]
    if equal_in_out:
        out1, s1, q1 = fused_block_conv(x, scale1, shift1, p["conv1_w"], stride=stride)
        res = x.reshape(N, H * W, Cin).astype(jnp.bfloat16)     # identity shortcut
    else:
        out1, s1, q1, res = fused_block_conv(
            x, scale1, shift1, p["conv1_w"], stride=stride, shortcut_w=p["short_w"])

    Ho, Wo = H // stride, W // stride
    scale2, shift2 = fold_bn(s1, q1, N * Ho * Wo, p["bn2_gamma"], p["bn2_beta"])

    # TODO(synk): F.dropout between relu(bn2) and conv2 for dropRate > 0 not implemented;
    #             the module default dropRate=0.0 makes it a no-op.
    # conv2( relu(bn2(out1)) ) + shortcut; residual add and next-bn stats fused in-kernel.
    y, s2, q2 = fused_block_conv(out1.reshape(N, Ho, Wo, Cout), scale2, shift2,
                                 p["conv2_w"], stride=1, residual=res)
    return y.reshape(N, Ho, Wo, Cout), (s2, q2)


def network_block_forward(x_nchw, blocks_params, stride):
    h = jnp.transpose(x_nchw, (0, 2, 3, 1))          # NCHW -> NHWC
    stats = None
    for i, p in enumerate(blocks_params):
        h, stats = basic_block(h, p, stride if i == 0 else 1, x_stats=stats)
    return jnp.transpose(h.astype(jnp.float32), (0, 3, 1, 2))   # NHWC -> NCHW

# ---------------------------------------------------------------------------
# Deterministic parameter init (shapes as nn.Conv2d / nn.BatchNorm2d imply).
# ---------------------------------------------------------------------------
def init_block_params(key, cin, cout, has_shortcut):
    ks = jax.random.split(key, 7)
    p = {
        "bn1_gamma": 1.0 + 0.1 * jax.random.normal(ks[0], (cin,), jnp.float32),
        "bn1_beta": 0.1 * jax.random.normal(ks[1], (cin,), jnp.float32),
        "conv1_w": 0.1 * jax.random.normal(ks[2], (3, 3, cin, cout), jnp.float32),
        "bn2_gamma": 1.0 + 0.1 * jax.random.normal(ks[3], (cout,), jnp.float32),
        "bn2_beta": 0.1 * jax.random.normal(ks[4], (cout,), jnp.float32),
        "conv2_w": 0.1 * jax.random.normal(ks[5], (3, 3, cout, cout), jnp.float32),
    }
    if has_shortcut:
        p["short_w"] = 0.1 * jax.random.normal(ks[6], (1, 1, cin, cout), jnp.float32)
    return p


def init_network_block_params(key, nb_layers, in_planes, out_planes):
    keys = jax.random.split(key, nb_layers)
    params = []
    for i in range(nb_layers):
        cin = in_planes if i == 0 else out_planes
        params.append(init_block_params(keys[i], cin, out_planes, cin != out_planes))
    return params


# ---------------------------------------------------------------------------
# Pure-JAX reference (f32, for the correctness check).
# ---------------------------------------------------------------------------
def _ref_bn_relu(x, gamma, beta):
    mean = jnp.mean(x, axis=(0, 1, 2))
    var = jnp.var(x, axis=(0, 1, 2))
    return jnp.maximum((x - mean) / jnp.sqrt(var + BN_EPS) * gamma + beta, 0.0)


def _ref_conv(x, w, stride, pad):
    return lax.conv_general_dilated(
        x, w, (stride, stride), ((pad, pad), (pad, pad)),
        dimension_numbers=("NHWC", "HWIO", "NHWC"),
        precision=lax.Precision.HIGHEST)


def _ref_basic_block(x, p, stride):
    cin, cout = x.shape[-1], p["conv1_w"].shape[-1]
    equal = (cin == cout)
    a = _ref_bn_relu(x, p["bn1_gamma"], p["bn1_beta"])
    out = _ref_conv(a, p["conv1_w"], stride, 1)
    res = x if equal else _ref_conv(a, p["short_w"], stride, 0)
    out = _ref_bn_relu(out, p["bn2_gamma"], p["bn2_beta"])
    out = _ref_conv(out, p["conv2_w"], 1, 1)
    return res + out


def reference_forward(x_nchw, blocks_params, stride):
    h = jnp.transpose(x_nchw, (0, 2, 3, 1))
    for i, p in enumerate(blocks_params):
        h = _ref_basic_block(h, p, stride if i == 0 else 1)
    return jnp.transpose(h, (0, 3, 1, 2))


# ---------------------------------------------------------------------------
if __name__ == "__main__":
    def run_case(key, n, cin, hw, cout, nb_layers, stride):
        kx, kp = jax.random.split(key)
        x_nchw = jax.random.normal(kx, (n, cin, hw, hw), dtype=jnp.float32)
        params = init_network_block_params(kp, nb_layers, cin, cout)

        y = jax.block_until_ready(network_block_forward(x_nchw, params, stride))
        assert y.shape == (n, cout, hw // stride, hw // stride), y.shape

        y_ref = reference_forward(x_nchw, params, stride)
        err = float(jnp.max(jnp.abs(y - y_ref)))
        ref_max = float(jnp.max(jnp.abs(y_ref)))
        # bf16 MXU inputs + bf16 activation storage between convs: compare at ~3% of
        # the reference's peak magnitude.
        assert err <= 3e-2 * max(1.0, ref_max), (err, ref_max)

    key = jax.random.PRNGKey(0)
    k1, k2 = jax.random.split(key)

    # Case 1: stride-2 entry conv with 1x1 shortcut, then an identity block; exercises
    # both the im2col (K=9*Cin, Cin<=32) and row-tap (K=3*Cin) MXU paths.
    run_case(k1, n=2, cin=4, hw=16, cout=40, nb_layers=2, stride=2)
    # Case 2: stride-1 block with a channel-growing 1x1 shortcut (WRN first group).
    run_case(k2, n=2, cin=8, hw=16, cout=24, nb_layers=1, stride=1)

    print("KERNEL_OK")
</pallas_src>

<mosaic_0001>
module attributes {stable_mosaic.version = 11 : i64} {
  func.func @kernel(%arg0: i32, %arg1: memref<1x16x16x4xf32, #tpu.memory_space<vmem>>, %arg2: memref<1x1x4xf32, #tpu.memory_space<vmem>>, %arg3: memref<1x1x4xf32, #tpu.memory_space<vmem>>) attributes {dimension_semantics = [#tpu.dimension_semantics<parallel>], iteration_bounds = array<i64: 2>, scalar_prefetch = 0 : i64, scratch_operands = 0 : i64, tpu.core_type = #tpu.core_type<tc>, window_params = [{transform_indices = @transform_0, window_bounds = array<i64: 1, 16, 16, 4>}, {transform_indices = @transform_1, window_bounds = array<i64: 1, 1, 4>}, {transform_indices = @transform_2, window_bounds = array<i64: 1, 1, 4>}]} {
    %c0 = arith.constant 0 : index
    %c0_0 = arith.constant 0 : index
    %c0_1 = arith.constant 0 : index
    %c0_2 = arith.constant 0 : index
    %0 = vector.load %arg1[%c0, %c0_0, %c0_1, %c0_2] : memref<1x16x16x4xf32, #tpu.memory_space<vmem>>, vector<1x16x16x4xf32>
    %1 = vector.shape_cast %0 : vector<1x16x16x4xf32> to vector<16x16x4xf32>
    %cst = arith.constant dense<0.000000e+00> : vector<16x4xf32>
    %2 = vector.multi_reduction <add>, %1, %cst [0] : vector<16x16x4xf32> to vector<16x4xf32>
    %cst_3 = arith.constant dense<0.000000e+00> : vector<4xf32>
    %3 = vector.multi_reduction <add>, %2, %cst_3 [0] : vector<16x4xf32> to vector<4xf32>
    %4 = vector.shape_cast %3 : vector<4xf32> to vector<1x4xf32>
    %c0_4 = arith.constant 0 : index
    %c0_5 = arith.constant 0 : index
    %c0_6 = arith.constant 0 : index
    %5 = vector.load %arg2[%c0_4, %c0_5, %c0_6] : memref<1x1x4xf32, #tpu.memory_space<vmem>>, vector<1x1x4xf32>
    %6 = vector.shape_cast %5 : vector<1x1x4xf32> to vector<1x4xf32>
    %7 = vector.shape_cast %4 : vector<1x4xf32> to vector<1x1x4xf32>
    tpu.vector_store %arg2[%c0_4, %c0_5, %c0_6], %7 {strides = array<i32>} : memref<1x1x4xf32, #tpu.memory_space<vmem>>, vector<1x1x4xf32>,
    %8 = arith.mulf %1, %1 : vector<16x16x4xf32>
    %cst_7 = arith.constant dense<0.000000e+00> : vector<16x4xf32>
    %9 = vector.multi_reduction <add>, %8, %cst_7 [0] : vector<16x16x4xf32> to vector<16x4xf32>
    %cst_8 = arith.constant dense<0.000000e+00> : vector<4xf32>
    %10 = vector.multi_reduction <add>, %9, %cst_8 [0] : vector<16x4xf32> to vector<4xf32>
    %11 = vector.shape_cast %10 : vector<4xf32> to vector<1x4xf32>
    %c0_9 = arith.constant 0 : index
    %c0_10 = arith.constant 0 : index
    %c0_11 = arith.constant 0 : index
    %12 = vector.load %arg3[%c0_9, %c0_10, %c0_11] : memref<1x1x4xf32, #tpu.memory_space<vmem>>, vector<1x1x4xf32>
    %13 = vector.shape_cast %12 : vector<1x1x4xf32> to vector<1x4xf32>
    %14 = vector.shape_cast %11 : vector<1x4xf32> to vector<1x1x4xf32>
    tpu.vector_store %arg3[%c0_9, %c0_10, %c0_11], %14 {strides = array<i32>} : memref<1x1x4xf32, #tpu.memory_space<vmem>>, vector<1x1x4xf32>,
    return
  }
  func.func @transform_0(%arg0: i32) -> (i32, i32, i32, i32) {
    %c0_i32 = arith.constant 0 : i32
    %c0_i32_0 = arith.constant 0 : i32
    %c0_i32_1 = arith.constant 0 : i32
    %c0_i32_2 = arith.constant 0 : i32
    return %arg0, %c0_i32, %c0_i32_0, %c0_i32_1 : i32, i32, i32, i32
  }
  func.func @transform_1(%arg0: i32) -> (i32, i32, i32) {
    %c0_i32 = arith.constant 0 : i32
    %c0_i32_0 = arith.constant 0 : i32
    %c0_i32_1 = arith.constant 0 : i32
    return %arg0, %c0_i32, %c0_i32_0 : i32, i32, i32
  }
  func.func @transform_2(%arg0: i32) -> (i32, i32, i32) {
    %c0_i32 = arith.constant 0 : i32
    %c0_i32_0 = arith.constant 0 : i32
    %c0_i32_1 = arith.constant 0 : i32
    return %arg0, %c0_i32, %c0_i32_0 : i32, i32, i32
  }
}

</mosaic_0001>

<bundles_post_ra>
// kernel: tpu_custom_call.1
= control target key start
LH: loop header
LB: loop body
LE: loop exit
PB: predicated region body
PF: predicated region fallthrough
CT: control target
= control target key end

     0   :  { %8 = vsyncpa [#allocation3], 0  ;;  %s1039_s0 = inlined_call_operand.vmem [shape: f32[2,16,16,4], index: 0, kind: input, shape index: {}]   ;;  %s1040_s1 = inlined_call_operand.hbm [shape: f32[2,1,4], index: 1, kind: output, shape index: {0}]   ;;  %s1041_s2 = inlined_call_operand.hbm [shape: f32[2,1,4], index: 2, kind: output, shape index: {1}]  }
   0x1   :  { %10 = vsyncpa [#allocation3 + $0x1], 0 }
   0x2   :  { %11 = vsyncpa [#allocation5], 0 }
   0x3   :  { %13 = vsyncpa [#allocation5 + $0x1], 0  ;;  %s642_s9 = smov 0   ;;  %s644_s10 = smov 0  }
   0x4   :  { %s646_s11 = smov 0   ;;  %s648_s12 = smov 0  }
   0x5 LB: > { %s663_s13 = sadd.s32 4294967295, %s623_s12   ;;  %s474_s14 = sadd.s32 4294967294, %s623_s12   ;;  %s623_s12 = sphi %s648_s12, %s1047_s12   ;;  %s619_s11 = sphi %s646_s11, %s1046_s11   ;;  %s615_s10 = sphi %s644_s10, %s1045_s10   ;;  %s611_s9 = sphi %s642_s9, %s1044_s9  }
   0x6   : > { %s667_s15 = sadd.s32 1, %s623_s12   ;;  %s52_s16 = sadd.s32 1, %s619_s11 }
   0x7   : > { %s49_s17 = ssub.s32 %s623_s12, %s667_s15  ;;  %p62_p0 = scmp.ne.s32.totalorder %s619_s11, %s615_s10 }
   0x8   : > { %p50_p1 = scmp.eq.s32.totalorder %s49_s17, 0  ;;  %p63_p2 = scmp.eq.s32.totalorder %s663_s13, 1 }
   0x9   : > { %p68_p3 = scmp.ne.s32.totalorder %s615_s10, %s611_s9  ;;  %p69_p4 = scmp.eq.s32.totalorder %s474_s14, 1 }
   0xa   : > { %s678_s18 = scalar_select %p50_p1, %s619_s11, %s52_s16  }
   0xb   : > { %p680_p5 = por %p63_p2, %p62_p0  ;;  %p684_p6 = por %p69_p4, %p68_p3 }
   0xc   : > { %p477_p7 = scmp.ge.s32.totalorder %s623_s12, 1  ;;  %p121_p8 = scmp.lt.s32.totalorder %s623_s12, 3 }
   0xe   : > { %p122_p9 = pnand %p477_p7, %p121_p8 }
   0xf   : > { %p146_p10 = scmp.lt.s32.totalorder (!%p122_p9), %s663_s13, 1  ;;  %vm183_vm0 = vcmask (!%p122_p9), 31744   ;;  %s910_s26 = sand.u32 (!%p122_p9), 1, %s615_s10   ;;  %vm255_vm1 = vcmask (!%p122_p9), 24576  }
  0x10   : > { %125 = sbr.rel (%p122_p9) target bundleno = 125 (0x7d), region = 24  ;;  %s139_s27 = scalar_lea.vmem (!%p122_p9), [#allocation2], %s910_s26 }
  0x11   : > { %s378_s28 = sshll.u32 (!%p122_p9), %s139_s27, 4  ;;  %s480_s29 = sshll.u32 (!%p122_p9), %s663_s13, 4  ;;  %s940_s28 = int_to_ptr.vmem [resolvable:$true] %s378_s28 }
  0x12   : > { %s953_s4 = scalar_lea.hbm (!%p122_p9), %s1040_s1, %s480_s29  ;;  %s362_s5 = scalar_lea.sflag (!%p122_p9), [#allocation3], %s910_s26 }
  0x13   : > { %s529_s6 = scalar_lea.vmem (!%p122_p9), %s940_s28, 16  ;;  %s625_s7 = smov (!%p122_p9), [#allocation2]  }
  0x14   : > { %p530_p11 = scmp.ne.s32.totalorder (!%p122_p9), %s940_s28, %s529_s6  ;;  %s533_s8 = sshll.u32 (!%p122_p9), %s625_s7, 4  ;;  %s534_s8 = int_to_ptr.vmem [resolvable:$false] %s533_s8 }
  0x15   : > { %s535_s14 = scalar_lea.vmem (!%p122_p9), %s534_s8, 32  ;;  %p536_p0 = scmp.lt.s32.totalorder (!%p122_p9), %s940_s28, %s534_s8 }
  0x16   : > { %p531_p12 = pnand (!%p122_p9), %p530_p11, %p680_p5  ;;  %p537_p1 = scmp.lt.s32.totalorder (!%p122_p9), %s535_s14, %s529_s6 }
  0x17   : > { %s147_s21 = scalar_select %p146_p10, %s663_s13, 1 }
  0x18   : > { %p532_p13 = pneg %p531_p12  ;;  %p538_p2 = por %p537_p1, %p536_p0 }
  0x19   : > { %s484_s22 = sshll.u32 %s147_s21, 8 }
  0x1a   : > { %s695_s25 = scalar_lea.vmem %s1039_s0, %s484_s22  ;;  %p539_p3 = pnand %p538_p2, %p532_p13 }
  0x1b   : > { %v151_v0 = vld [vmem:[%s695_s25] sm:$0xff]  ;;  %v699_v1 = vld [vmem:[%s695_s25 + $0x8] sm:$0xff]  ;;  %v702_v2 = vld [vmem:[%s695_s25 + $0x10] sm:$0xff] }
  0x1c   : > { %v705_v3 = vld [vmem:[%s695_s25 + $0x18] sm:$0xff]  ;;  %v708_v4 = vld [vmem:[%s695_s25 + $0x20] sm:$0xff]  ;;  %v711_v5 = vld [vmem:[%s695_s25 + $0x28] sm:$0xff]  ;;  %v184_v6 = vsel %vm183_vm0, %v151_v0, 0.0  ;;  %v185_v7 = vsel %vm183_vm0, %v702_v2, 0.0  ;;  %v215_v8 = vsel %vm183_vm0, %v699_v1, 0.0  ;;  %v257_v58 = vmul.f32 %v151_v0, %v151_v0 }
  0x1d   : > { %v719_v9 = vld [vmem:[%s695_s25 + $0x30] sm:$0xff]  ;;  %v186_v10 = vadd.f32 %v185_v7, %v184_v6  ;;  %v187_v11 = vsel %vm183_vm0, %v708_v4, 0.0  ;;  %v216_v12 = vsel %vm183_vm0, %v705_v3, 0.0  ;;  %v218_v13 = vsel %vm183_vm0, %v711_v5, 0.0  ;;  %v728_v14 = vld [vmem:[%s695_s25 + $0x38] sm:$0xff]  ;;  %v733_v17 = vld [vmem:[%s695_s25 + $0x40] sm:$0xff] }
  0x1e   : > { %v189_v15 = vsel %vm183_vm0, %v719_v9, 0.0  ;;  %v217_v16 = vadd.f32 %v216_v12, %v215_v8  ;;  %v220_v19 = vsel %vm183_vm0, %v728_v14, 0.0  ;;  %v738_v20 = vld [vmem:[%s695_s25 + $0x48] sm:$0xff]  ;;  %v191_v21 = vsel %vm183_vm0, %v733_v17, 0.0  ;;  %v743_v23 = vld [vmem:[%s695_s25 + $0x50] sm:$0xff]  ;;  %v748_v26 = vld [vmem:[%s695_s25 + $0x58] sm:$0xff] }
  0x1f   : > { %v188_v18 = vadd.f32 %v187_v11, %v186_v10  ;;  %v222_v25 = vsel %vm183_vm0, %v738_v20, 0.0  ;;  %v193_v27 = vsel %vm183_vm0, %v743_v23, 0.0  ;;  %v753_v29 = vld [vmem:[%s695_s25 + $0x60] sm:$0xff]  ;;  %v224_v31 = vsel %vm183_vm0, %v748_v26, 0.0  ;;  %v758_v32 = vld [vmem:[%s695_s25 + $0x68] sm:$0xff]  ;;  %v763_v35 = vld [vmem:[%s695_s25 + $0x70] sm:$0xff] }
  0x20   : > { %v219_v22 = vadd.f32 %v218_v13, %v217_v16  ;;  %v195_v33 = vsel %vm183_vm0, %v753_v29, 0.0  ;;  %v226_v37 = vsel %vm183_vm0, %v758_v32, 0.0  ;;  %v768_v38 = vld [vmem:[%s695_s25 + $0x78] sm:$0xff]  ;;  %v197_v39 = vsel %vm183_vm0, %v763_v35, 0.0  ;;  %v773_v41 = vld [vmem:[%s695_s25 + $0x80] sm:$0xff]  ;;  %v778_v44 = vld [vmem:[%s695_s25 + $0x88] sm:$0xff] }
  0x21   : > { %v190_v24 = vadd.f32 %v189_v15, %v188_v18  ;;  %v228_v43 = vsel %vm183_vm0, %v768_v38, 0.0  ;;  %v199_v45 = vsel %vm183_vm0, %v773_v41, 0.0  ;;  %v783_v47 = vld [vmem:[%s695_s25 + $0x90] sm:$0xff]  ;;  %v230_v49 = vsel %vm183_vm0, %v778_v44, 0.0  ;;  %v788_v50 = vld [vmem:[%s695_s25 + $0x98] sm:$0xff]  ;;  %v793_v53 = vld [vmem:[%s695_s25 + $0xa0] sm:$0xff] }
  0x22   : > { %v221_v28 = vadd.f32 %v220_v19, %v219_v22  ;;  %v201_v51 = vsel %vm183_vm0, %v783_v47, 0.0  ;;  %v796_v54 = vld [vmem:[%s695_s25 + $0xa8] sm:$0xff]  ;;  %v799_v55 = vld [vmem:[%s695_s25 + $0xb0] sm:$0xff]  ;;  %v232_v57 = vsel %vm183_vm0, %v788_v50, 0.0  ;;  %v804_v59 = vld [vmem:[%s695_s25 + $0xb8] sm:$0xff]  ;;  %v203_v60 = vsel %vm183_vm0, %v793_v53, 0.0 }
  0x23   : > { %v192_v30 = vadd.f32 %v191_v21, %v190_v24  ;;  %v205_v61 = vsel %vm183_vm0, %v799_v55, 0.0  ;;  %v234_v63 = vsel %vm183_vm0, %v796_v54, 0.0  ;;  %v813_v6 = vld [vmem:[%s695_s25 + $0xc0] sm:$0xff]  ;;  %v816_v7 = vld [vmem:[%s695_s25 + $0xc8] sm:$0xff]  ;;  %v819_v8 = vld [vmem:[%s695_s25 + $0xd0] sm:$0xff]  ;;  %v236_v10 = vsel %vm183_vm0, %v804_v59, 0.0 }
  0x24   : > { %v223_v34 = vadd.f32 %v222_v25, %v221_v28  ;;  %v259_v11 = vmul.f32 %v702_v2, %v702_v2  ;;  %v261_v12 = vmul.f32 %v708_v4, %v708_v4  ;;  %v828_v13 = vld [vmem:[%s695_s25 + $0xd8] sm:$0xff]  ;;  %v831_v15 = vld [vmem:[%s695_s25 + $0xe0] sm:$0xff]  ;;  %v207_v16 = vsel %vm183_vm0, %v813_v6, 0.0  ;;  %v840_v22 = vld [vmem:[%s695_s25 + $0xe8] sm:$0xff] }
  0x25   : > { %v194_v36 = vadd.f32 %v193_v27, %v192_v30  ;;  %v209_v18 = vsel %vm183_vm0, %v819_v8, 0.0  ;;  %v238_v21 = vsel %vm183_vm0, %v816_v7, 0.0  ;;  %v843_v2 = vld [vmem:[%s695_s25 + $0xf0] sm:$0xff]  ;;  %v211_v24 = vsel %vm183_vm0, %v831_v15, 0.0 }
  0x26   : > { %v225_v40 = vadd.f32 %v224_v31, %v223_v34  ;;  %v240_v25 = vsel %vm183_vm0, %v828_v13, 0.0  ;;  %v263_v27 = vmul.f32 %v719_v9, %v719_v9  ;;  %v213_v28 = vsel %vm183_vm0, %v843_v2, 0.0  ;;  %v858_v34 = vld [vmem:[%s695_s25 + $0xf8] sm:$0xff] }
  0x27   : > { %v196_v42 = vadd.f32 %v195_v33, %v194_v36  ;;  %v242_v31 = vsel %vm183_vm0, %v840_v22, 0.0  ;;  %v265_v33 = vmul.f32 %v733_v17, %v733_v17  ;;  %v260_v17 = vmul.f32 %v705_v3, %v705_v3 }
  0x28   : > { %v227_v46 = vadd.f32 %v226_v37, %v225_v40  ;;  %v289_v37 = vsel %vm183_vm0, %v257_v58, 0.0  ;;  %v292_v40 = vsel %vm183_vm0, %v261_v12, 0.0  ;;  %v269_v3 = vmul.f32 %v753_v29, %v753_v29 }
  0x29   : > { %v198_v48 = vadd.f32 %v197_v39, %v196_v42  ;;  %v290_v39 = vsel %vm183_vm0, %v259_v11, 0.0  ;;  %v244_v42 = vsel %vm183_vm0, %v858_v34, 0.0 }
  0x2a   : > { %v229_v52 = vadd.f32 %v228_v43, %v227_v46  ;;  %v258_v43 = vmul.f32 %v699_v1, %v699_v1  ;;  %v266_v1 = vmul.f32 %v738_v20, %v738_v20  ;;  %v321_v20 = vsel %vm183_vm0, %v260_v17, 0.0 }
  0x2b   : > { %v200_v56 = vadd.f32 %v199_v45, %v198_v48  ;;  %v291_v45 = vadd.f32 %v290_v39, %v289_v37  ;;  %v267_v48 = vmul.f32 %v743_v23, %v743_v23  ;;  %v277_v37 = vmul.f32 %v793_v53, %v793_v53 }
  0x2c   : > { %v231_v62 = vadd.f32 %v230_v49, %v229_v52  ;;  %v294_v49 = vsel %vm183_vm0, %v263_v27, 0.0  ;;  %v262_v52 = vmul.f32 %v711_v5, %v711_v5  ;;  %v271_v5 = vmul.f32 %v763_v35, %v763_v35 }
  0x2d   : > { %v202_v0 = vadd.f32 %v201_v51, %v200_v56  ;;  %v264_v56 = vmul.f32 %v728_v14, %v728_v14  ;;  %v298_v14 = vsel %vm183_vm0, %v267_v48, 0.0  ;;  %v275_v27 = vmul.f32 %v783_v47, %v783_v47 }
  0x2e   : > { %v233_v19 = vadd.f32 %v232_v57, %v231_v62  ;;  %v293_v57 = vadd.f32 %v292_v40, %v291_v45  ;;  %v323_v12 = vsel %vm183_vm0, %v262_v52, 0.0  ;;  %v274_v47 = vmul.f32 %v778_v44, %v778_v44 }
  0x2f   : > { %v204_v4 = vadd.f32 %v203_v60, %v202_v0  ;;  %v296_v60 = vsel %vm183_vm0, %v265_v33, 0.0  ;;  %v320_v0 = vsel %vm183_vm0, %v258_v43, 0.0  ;;  %v325_v35 = vsel %vm183_vm0, %v264_v56, 0.0 }
  0x30   : > { %v235_v30 = vadd.f32 %v234_v63, %v233_v19  ;;  %v295_v62 = vadd.f32 %v294_v49, %v293_v57  ;;  %v322_v29 = vadd.f32 %v321_v20, %v320_v0  ;;  %v306_v45 = vsel %vm183_vm0, %v275_v27, 0.0 }
  0x31   : > { %v206_v36 = vadd.f32 %v205_v61, %v204_v4  ;;  %v268_v61 = vmul.f32 %v748_v26, %v748_v26  ;;  %v273_v26 = vmul.f32 %v773_v41, %v773_v41  ;;  %v327_v41 = vsel %vm183_vm0, %v266_v1, 0.0 }
  0x32   : > { %v237_v9 = vadd.f32 %v236_v10, %v235_v30  ;;  %v297_v11 = vadd.f32 %v296_v60, %v295_v62  ;;  %v276_v53 = vmul.f32 %v788_v50, %v788_v50  ;;  %v281_v44 = vmul.f32 %v813_v6, %v813_v6 }
  0x33   : > { %v208_v46 = vadd.f32 %v207_v16, %v206_v36  ;;  %v304_v39 = vsel %vm183_vm0, %v273_v26, 0.0  ;;  %v329_v40 = vsel %vm183_vm0, %v268_v61, 0.0  ;;  %v283_v50 = vmul.f32 %v819_v8, %v819_v8 }
  0x34   : > { %v239_v51 = vadd.f32 %v238_v21, %v237_v9  ;;  %v270_v21 = vmul.f32 %v758_v32, %v758_v32  ;;  %v299_v4 = vadd.f32 %v298_v14, %v297_v11  ;;  %v280_v6 = vmul.f32 %v804_v59, %v804_v59 }
  0x35   : > { %v210_v58 = vadd.f32 %v209_v18, %v208_v46  ;;  %v300_v18 = vsel %vm183_vm0, %v269_v3, 0.0  ;;  %v335_v3 = vsel %vm183_vm0, %v274_v47, 0.0  ;;  %v337_v62 = vsel %vm183_vm0, %v276_v53, 0.0 }
  0x36   : > { %v241_v23 = vadd.f32 %v240_v25, %v239_v51  ;;  %v301_v33 = vadd.f32 %v300_v18, %v299_v4  ;;  %v331_v46 = vsel %vm183_vm0, %v270_v21, 0.0  ;;  %v308_v51 = vsel %vm183_vm0, %v277_v37, 0.0 }
  0x37   : > { %v212_v63 = vadd.f32 %v211_v24, %v210_v58  ;;  %v324_v24 = vadd.f32 %v323_v12, %v322_v29  ;;  %v282_v59 = vmul.f32 %v816_v7, %v816_v7  ;;  %v314_v0 = vsel %vm183_vm0, %v283_v50, 0.0 }
  0x38   : > { %v243_v10 = vadd.f32 %v242_v31, %v241_v23  ;;  %v272_v31 = vmul.f32 %v768_v38, %v768_v38  ;;  %v279_v38 = vmul.f32 %v799_v55, %v799_v55  ;;  %v278_v55 = vmul.f32 %v796_v54, %v796_v54 }
  0x39   : > { %v214_v16 = vadd.f32 %v213_v28, %v212_v63  ;;  %v302_v28 = vsel %vm183_vm0, %v271_v5, 0.0  ;;  %v326_v36 = vadd.f32 %v325_v35, %v324_v24  ;;  %v285_v54 = vmul.f32 %v831_v15, %v831_v15 }
  0x3a   : > { %v245_v19 = vadd.f32 %v244_v42, %v243_v10  ;;  %v303_v9 = vadd.f32 %v302_v28, %v301_v33  ;;  %v333_v52 = vsel %vm183_vm0, %v272_v31, 0.0  ;;  %v310_v1 = vsel %vm183_vm0, %v279_v38, 0.0 }
  0x3b   : > { %v246_v25 = vsel %vm183_vm0, %v214_v16, 0.0  ;;  %v328_v42 = vadd.f32 %v327_v41, %v326_v36  ;;  %v312_v5 = vsel %vm183_vm0, %v281_v44, 0.0  ;;  %v339_v20 = vsel %vm183_vm0, %v278_v55, 0.0 }
  0x3c   : > { %v247_v30 = vsel %vm183_vm0, %v245_v19, 0.0  ;;  %v305_v17 = vadd.f32 %v304_v39, %v303_v9  ;;  %v284_v15 = vmul.f32 %v828_v13, %v828_v13  ;;  %v287_v7 = vmul.f32 %v843_v2, %v843_v2 }
  0x3d   : > { %v248_v32 = vadd.f32 %v247_v30, %v246_v25  ;;  %v330_v48 = vadd.f32 %v329_v40, %v328_v42  ;;  %v316_v12 = vsel %vm183_vm0, %v285_v54, 0.0  ;;  %v341_v16 = vsel %vm183_vm0, %v280_v6, 0.0 }
  0x3e   : > { %v307_v56 = vadd.f32 %v306_v45, %v305_v17  ;;  %v286_v18 = vmul.f32 %v840_v22, %v840_v22  ;;  %v343_v2 = vsel %vm183_vm0, %v282_v59, 0.0 }
  0x3f   : > { %v249_v43 = vrot.slane %v248_v32, 4  ;;  %v332_v57 = vadd.f32 %v331_v46, %v330_v48 }
  0x40   : > { %v309_v60 = vadd.f32 %v308_v51, %v307_v56 }
  0x41   : > { %v250_v49 = vadd.f32 %v249_v43, %v248_v32  ;;  %v334_v23 = vadd.f32 %v333_v52, %v332_v57 }
  0x42   : > { %v311_v8 = vadd.f32 %v310_v1, %v309_v60 }
  0x43   : > { %v251_v58 = vrot.slane %v250_v49, 2  ;;  %v336_v63 = vadd.f32 %v335_v3, %v334_v23 }
  0x44   : > { %v313_v10 = vadd.f32 %v312_v5, %v311_v8 }
  0x45   : > { %v252_v61 = vadd.f32 %v251_v58, %v250_v49  ;;  %v338_v11 = vadd.f32 %v337_v62, %v336_v63 }
  0x46   : > { %v315_v13 = vadd.f32 %v314_v0, %v313_v10 }
  0x47   : > { %v253_v14 = vrot.slane %v252_v61, 1  ;;  %v340_v26 = vadd.f32 %v339_v20, %v338_v11 }
  0x48   : > { %v317_v35 = vadd.f32 %v316_v12, %v315_v13 }
  0x49   : > { %v254_v29 = vadd.f32 %v253_v14, %v252_v61  ;;  %v342_v19 = vadd.f32 %v341_v16, %v340_v26 }
  0x4b   : > { %256 = vst.msk [vmem:[%s139_s27] sm:$0x1] %vm255_vm1, %v254_v29 }
  0x4c   : > { %542 = shalt.err (!%p539_p3)
}
  0x4d   : > { %s543_s16 = scalar_lea.hbm %s953_s4, 16  ;;  %s547_s22 = scalar_lea.hbm %s1040_s1, 32 }
  0x4e   : > { %p544_p4 = scmp.ne.s32.totalorder %s953_s4, %s543_s16  ;;  %p548_p9 = scmp.lt.u32.totalorder %s953_s4, %s1040_s1 }
  0x4f   : > { %p549_p10 = scmp.lt.u32.totalorder %s547_s22, %s543_s16  ;;  %p551_p12 = scmp.lt.u32.totalorder %s543_s16, %s953_s4 }
  0x50   : > { %p545_p7 = pnand %p544_p4, %p680_p5 }
  0x51   : > { %p550_p11 = por %p549_p10, %p548_p9 }
  0x52   : > { %p546_p8 = pneg %p545_p7 }
  0x53   : > { %p552_p13 = por %p551_p12, %p550_p11 }
  0x55   : > { %p553_p0 = pnand %p552_p13, %p546_p8 }
  0x57   : > { %556 = shalt.err (!%p553_p0)
}
  0x58   : > { %485 = dma.vmem_to_hbm [thread:$0]  (%p680_p5), %s940_s28, 16, %s953_s4, %s362_s5   ;;  %v288_v22 = vmul.f32 %v858_v34, %v858_v34  ;;  %v318_v21 = vsel %vm183_vm0, %v287_v7, 0.0  ;;  %v345_v4 = vsel %vm183_vm0, %v284_v15, 0.0  ;;  %v344_v24 = vadd.f32 %v343_v2, %v342_v19 }
  0x59   : > { %v347_v25 = vsel %vm183_vm0, %v286_v18, 0.0  ;;  %v319_v27 = vadd.f32 %v318_v21, %v317_v35  ;;  %s145_s25 = scalar_lea.vmem [#allocation4], %s910_s26  ;;  %s997_s3 = scalar_lea.hbm %s1041_s2, %s480_s29 }
  0x5a   : > { %v346_v28 = vadd.f32 %v345_v4, %v344_v24  ;;  %v349_v41 = vsel %vm183_vm0, %v288_v22, 0.0  ;;  %s391_s27 = sshll.u32 %s145_s25, 4  ;;  %s366_s4 = scalar_lea.sflag [#allocation5], %s910_s26  ;;  %s990_s27 = int_to_ptr.vmem [resolvable:$true] %s391_s27 }
  0x5b   : > { %v351_v33 = vsel %vm183_vm0, %v319_v27, 0.0  ;;  %s557_s5 = scalar_lea.vmem %s990_s27, 16  ;;  %s626_s6 = smov [#allocation4]  }
  0x5c   : > { %v348_v30 = vadd.f32 %v347_v25, %v346_v28  ;;  %p558_p1 = scmp.ne.s32.totalorder %s990_s27, %s557_s5  ;;  %s561_s7 = sshll.u32 %s626_s6, 4  ;;  %s562_s7 = int_to_ptr.vmem [resolvable:$false] %s561_s7 }
  0x5d   : > { %s563_s8 = scalar_lea.vmem %s562_s7, 32  ;;  %p564_p4 = scmp.lt.s32.totalorder %s990_s27, %s562_s7 }
  0x5e   : > { %v350_v31 = vadd.f32 %v349_v41, %v348_v30  ;;  %p559_p2 = pnand %p558_p1, %p680_p5  ;;  %p565_p7 = scmp.lt.s32.totalorder %s563_s8, %s557_s5 }
  0x60   : > { %v352_v34 = vsel %vm183_vm0, %v350_v31, 0.0  ;;  %p560_p3 = pneg %p559_p2  ;;  %p566_p8 = por %p565_p7, %p564_p4 }
  0x61   : > { %v353_v36 = vadd.f32 %v352_v34, %v351_v33 }
  0x62   : > { %p567_p9 = pnand %p566_p8, %p560_p3 }
  0x63   : > { %v354_v32 = vrot.slane %v353_v36, 4 }
  0x65   : > { %v355_v37 = vadd.f32 %v354_v32, %v353_v36 }
  0x67   : > { %v356_v39 = vrot.slane %v355_v37, 2 }
  0x69   : > { %v357_v40 = vadd.f32 %v356_v39, %v355_v37 }
  0x6b   : > { %v358_v47 = vrot.slane %v357_v40, 1 }
  0x6d   : > { %v359_v9 = vadd.f32 %v358_v47, %v357_v40 }
  0x6f   : > { %360 = vst.msk [vmem:[%s145_s25] sm:$0x1] %vm255_vm1, %v359_v9 }
  0x70   : > { %570 = shalt.err (!%p567_p9)
}
  0x71   : > { %s571_s13 = scalar_lea.hbm %s997_s3, 16  ;;  %s575_s14 = scalar_lea.hbm %s1041_s2, 32 }
  0x72   : > { %p572_p10 = scmp.ne.s32.totalorder %s997_s3, %s571_s13  ;;  %p576_p13 = scmp.lt.u32.totalorder %s997_s3, %s1041_s2 }
  0x73   : > { %p577_p0 = scmp.lt.u32.totalorder %s575_s14, %s571_s13  ;;  %p579_p2 = scmp.lt.u32.totalorder %s571_s13, %s997_s3 }
  0x74   : > { %p573_p11 = pnand %p572_p10, %p680_p5 }
  0x75   : > { %p578_p1 = por %p577_p0, %p576_p13 }
  0x76   : > { %p574_p12 = pneg %p573_p11 }
  0x77   : > { %p580_p3 = por %p579_p2, %p578_p1 }
  0x79   : > { %p581_p4 = pnand %p580_p3, %p574_p12 }
  0x7b   : > { %584 = shalt.err (!%p581_p4)
}
  0x7c   : > { %486 = dma.vmem_to_hbm [thread:$0]  (%p680_p5), %s990_s27, 16, %s997_s3, %s366_s4  }
  0x7d PF: > { %p496_p7 = scmp.ge.s32.totalorder %s623_s12, 2  ;;  %s403_s21 = sand.u32 1, %s611_s9  }
  0x7e   : > { %s404_s22 = scalar_lea.sflag [#allocation3], %s403_s21 }
  0x7f   : > { %p490_p8 = pnand %p496_p7, %p684_p6 }
  0x81   : > { %602 = dma.done.wait (!%p490_p8), %s404_s22, 16  }
  0x82   : > { %604 = vsyncadd (!%p490_p8), %s404_s22, 4294967280  ;;  %s412_s23 = scalar_lea.sflag [#allocation5], %s403_s21 }
  0x83   : > { %606 = dma.done.wait (!%p490_p8), %s412_s23, 16  }
  0x84   : > { %608 = vsyncadd (!%p490_p8), %s412_s23, 4294967280  ;;  %p16_p5 = scmp.ge.s32.totalorder %s667_s15, 4   ;;  %s1044_s9 = smov %s615_s10 }
  0x85   : > { %s1045_s10 = smov %s619_s11  ;;  %s1046_s11 = smov %s678_s18 }
  0x86   : > { %s1047_s12 = smov %s667_s15  ;;  %18 = sbr.rel (!%p16_p5) target bundleno = 5 (0x5), region = 76 }
  0x8d   :  { %416 = vsyncpa [#allocation3], 1 }
  0x8e   :  { %418 = vsyncpa [#allocation3 + $0x1], 1 }
  0x8f   :  { %419 = vsyncpa [#allocation5], 1 }
  0x90   :  { %421 = vsyncpa [#allocation5 + $0x1], 1 }

</bundles_post_ra>
